<compile_context>
chip_gen: v5e
topology: v5e:2x2
jax: 0.10.0
libtpu: 0.0.40
codegen_flags: <defaults>
</compile_context>

<pallas_src>
import functools

import jax
import jax.numpy as jnp
from jax.experimental import pallas as pl
from jax.experimental.pallas import tpu as pltpu


def _fm_kernel(idx_ref, ut2_ref, it_ref, o_ref, *, n_user_slots):
    # idx_ref: [tb, Fu+Fi] int32 (user slots first, then item slots)
    # ut2_ref: [Nu, 2D] bf16  (renormed user table | renormed user table squared)
    # it_ref : [Ni, D]  bf16  (renormed item table; row 0 = padding -> zeros)
    tb, n_slots = idx_ref.shape
    Nu = ut2_ref.shape[0]
    Ni, D = it_ref.shape
    n_item_slots = n_slots - n_user_slots

    idx = idx_ref[...]                                             # [tb, Fu+Fi]
    iota_u = jax.lax.broadcasted_iota(jnp.int32, (tb, Nu), 1)
    iota_i = jax.lax.broadcasted_iota(jnp.int32, (tb, Ni), 1)

    # ---- fused gather: bf16 multi-hot counts (VPU) x bf16 table (MXU, 1 pass) ----
    counts_u = jnp.zeros((tb, Nu), jnp.bfloat16)
    for f in range(n_user_slots):                                  # tiny static loop
        counts_u = counts_u + (idx[:, f:f + 1] == iota_u).astype(jnp.bfloat16)
    counts_i = jnp.zeros((tb, Ni), jnp.bfloat16)
    for f in range(n_user_slots, n_user_slots + n_item_slots):
        counts_i = counts_i + (idx[:, f:f + 1] == iota_i).astype(jnp.bfloat16)

    # One fused matmul for the user path (sum and sum-of-squares), one for items.
    ud = jnp.dot(counts_u, ut2_ref[...], preferred_element_type=jnp.float32)   # [tb, 2D]
    item_sum = jnp.dot(counts_i, it_ref[...], preferred_element_type=jnp.float32)  # [tb, D]

    user_sum = ud[:, :D]            # sum_f user_emb_f
    user_sqs = ud[:, D:]            # sum_f user_emb_f^2

    # feats = [user slots..., item_sum]  (concat folded into the sums)
    sum_all = user_sum + item_sum
    sum_sq = user_sqs + item_sum * item_sum
    cross = 0.5 * jnp.sum(sum_all * sum_all - sum_sq, axis=-1, keepdims=True)  # [tb, 1]
    o_ref[...] = jax.nn.sigmoid(cross).astype(o_ref.dtype)


def _renorm_max_norm1(tab_f32):
    # PyTorch nn.Embedding(max_norm=1) rule: scale by 1/(norm + 1e-7) iff norm > 1.
    nrm = jnp.sqrt(jnp.sum(tab_f32 * tab_f32, axis=-1, keepdims=True))
    return tab_f32 * jnp.where(nrm > 1.0, 1.0 / (nrm + 1e-7), 1.0)


def _pad_rows_to(t, mult):
    pad = (-t.shape[0]) % mult
    return jnp.pad(t, ((0, pad), (0, 0))) if pad else t


def _pick_tb(B, n_counts_cols):
    """Batch-tile rows, sized against the dominant per-tile buffer (bf16 counts)."""
    # Keep bf16 counts ([tb, Nu]+[tb, Ni]) under ~8 MiB so inputs + scratch stay
    # well inside the smallest-generation (v7x) scoped-VMEM budget.
    vmem_rows = (8 * 1024 * 1024) // max(2 * n_counts_cols, 1)
    cap = max(8, min(2048, (vmem_rows // 8) * 8))
    if B <= 8:
        return B            # too small to split into legal multiple-of-8 tiles
    # Guarantee >= 2 grid steps so the "parallel" batch axis can shard across
    # both v7x TensorCores (no effect on single-TC v5e/v6e).
    half = ((B + 1) // 2 + 7) // 8 * 8
    return min(cap, half)


def fm_forward(u_idx, i_idx, user_table, item_table):
    """u_idx: [B, Fu] int, i_idx: [B, Fi] int,
    user_table: [n_user_feats, D], item_table: [n_item_feats, D] (row 0 = padding).
    Returns sigmoid(FM second-order cross term): [B, 1] float32."""
    B, Fu = u_idx.shape
    _, Fi = i_idx.shape
    D = user_table.shape[1]

    # ---- hoisted prologue (runs ONCE, outside the kernel grid) ----------------
    # max_norm=1 renorm in f32, plus the user squared table; concatenated along
    # lanes so the user path is a single [Nu, 2D] MXU RHS. Stored bf16 for
    # single-pass MXU matmuls.
    ut_f = _renorm_max_norm1(user_table.astype(jnp.float32))
    it_f = _renorm_max_norm1(item_table.astype(jnp.float32))
    ut2 = jnp.concatenate([ut_f, ut_f * ut_f], axis=1).astype(jnp.bfloat16)  # [Nu, 2D]
    it = it_f.astype(jnp.bfloat16)                                           # [Ni, D]

    # Pad table rows to a multiple of 128 so the one-hot gather contraction is
    # MXU-native and stays fully VMEM-resident.
    # TODO(synk): for very large feature vocabularies (>~2-4K rows) switch the
    # gather to a scalar-prefetch-driven DMA gather instead of the [tb, Nvocab]
    # one-hot matmul (the one-hot path is O(tb*Nvocab) in VPU compares and VMEM).
    ut2 = _pad_rows_to(ut2, 128)
    it = _pad_rows_to(it, 128)
    Nu, Ni = ut2.shape[0], it.shape[0]

    # Merge index arrays -> single [B, Fu+Fi] int32 input (one DMA per step).
    idx = jnp.concatenate(
        [u_idx.astype(jnp.int32), i_idx.astype(jnp.int32)], axis=1)
    Ftot = Fu + Fi

    tb = _pick_tb(B, Nu + Ni)
    Bp = pl.cdiv(B, tb) * tb
    if Bp != B:
        idx = jnp.pad(idx, ((0, Bp - B), (0, 0)))

    kernel = functools.partial(_fm_kernel, n_user_slots=Fu)
    out = pl.pallas_call(
        kernel,
        out_shape=jax.ShapeDtypeStruct((Bp, 1), jnp.float32),
        grid_spec=pltpu.PrefetchScalarGridSpec(
            num_scalar_prefetch=0,
            grid=(Bp // tb,),
            in_specs=[
                pl.BlockSpec((tb, Ftot), lambda b: (b, 0)),
                pl.BlockSpec((Nu, 2 * D), lambda b: (0, 0)),  # constant -> fetched once
                pl.BlockSpec((Ni, D), lambda b: (0, 0)),      # constant -> fetched once
            ],
            out_specs=pl.BlockSpec((tb, 1), lambda b: (b, 0)),
        ),
        compiler_params=pltpu.CompilerParams(
            dimension_semantics=("parallel",),
            vmem_limit_bytes=32 * 1024 * 1024,   # per-tile usage is ~O(1-10 MiB); safe on v5e/v6e/v7x
        ),
    )(idx, ut2, it)
    return out[:B]


if __name__ == "__main__":
    key = jax.random.PRNGKey(0)
    total_user_features = 64
    total_item_features = 20          # movie genres 0..19; 0 is padding_idx
    n_factors = 128
    B, Fu, Fi = 2, 3, 4               # batch, user feature slots, item feature slots

    k1, k2, k3, k4 = jax.random.split(key, 4)

    # nn.Embedding-style init: N(0, 1); padding row zeroed. Stored bf16 in HBM.
    user_table = jax.random.normal(k1, (total_user_features, n_factors), jnp.float32)
    item_table = jax.random.normal(k2, (total_item_features, n_factors), jnp.float32)
    item_table = item_table.at[0].set(0.0)                 # padding_idx=0
    user_table_bf16 = user_table.astype(jnp.bfloat16)
    item_table_bf16 = item_table.astype(jnp.bfloat16)

    u = jax.random.randint(k3, (B, Fu), 0, total_user_features, dtype=jnp.int32)
    i = jax.random.randint(k4, (B, Fi), 0, total_item_features, dtype=jnp.int32)

    logits = jax.block_until_ready(fm_forward(u, i, user_table_bf16, item_table_bf16))
    assert logits.shape == (B, 1), logits.shape

    # --- Reference 1 (strict): same math as PyTorch's FMcross, expanded over the
    # same bf16-quantized renormed tables (value table and squared table) the
    # kernel consumes; matmul accumulation is f32 in both -> tight tolerance.
    ut_f = _renorm_max_norm1(user_table_bf16.astype(jnp.float32))
    it_f = _renorm_max_norm1(item_table_bf16.astype(jnp.float32))
    ut_q = ut_f.astype(jnp.bfloat16).astype(jnp.float32)
    utsq_q = (ut_f * ut_f).astype(jnp.bfloat16).astype(jnp.float32)
    it_q = it_f.astype(jnp.bfloat16).astype(jnp.float32)

    user_sum = jnp.sum(ut_q[u], axis=1)                    # [B, D]
    user_sqs = jnp.sum(utsq_q[u], axis=1)                  # [B, D]
    item_sum = jnp.sum(it_q[i], axis=1)                    # [B, D]
    sum_all = user_sum + item_sum
    sum_sq = user_sqs + item_sum * item_sum
    ref_strict = jax.nn.sigmoid(
        0.5 * jnp.sum(sum_all * sum_all - sum_sq, axis=1, keepdims=True))
    assert jnp.allclose(logits, ref_strict, atol=1e-4, rtol=1e-4), (logits, ref_strict)

    # --- Reference 2 (sanity): literal PyTorch-structured forward in f32 on the
    # bf16-stored tables (gather -> concat -> square-of-sum minus sum-of-square).
    # Looser tolerance: the kernel stores the renormed/squared tables in bf16.
    user_emb = ut_f[u]                                     # [B, Fu, D]
    item_embs = it_f[i]                                    # [B, Fi, D]
    item_emb_sum = jnp.sum(item_embs, axis=1, keepdims=True)
    feats = jnp.concatenate([user_emb, item_emb_sum], axis=1)
    sq_of_sum = jnp.sum(feats, axis=1) ** 2
    sum_of_sq = jnp.sum(feats ** 2, axis=1)
    ref_torch = jax.nn.sigmoid(
        0.5 * jnp.sum(sq_of_sum - sum_of_sq, axis=1, keepdims=True))
    assert jnp.allclose(logits, ref_torch, atol=2e-2), (logits, ref_torch)

    print("KERNEL_OK")
</pallas_src>

<mosaic_0001>
module attributes {stable_mosaic.version = 11 : i64} {
  func.func @_fm_kernel(%arg0: i32, %arg1: memref<2x7xi32, #tpu.memory_space<vmem>>, %arg2: memref<128x256xbf16, #tpu.memory_space<vmem>>, %arg3: memref<128x128xbf16, #tpu.memory_space<vmem>>, %arg4: memref<2x1xf32, #tpu.memory_space<vmem>>) attributes {dimension_semantics = [#tpu.dimension_semantics<parallel>], iteration_bounds = array<i64: 1>, scalar_prefetch = 0 : i64, scratch_operands = 0 : i64, tpu.core_type = #tpu.core_type<tc>, window_params = [{transform_indices = @transform_0, window_bounds = array<i64: 2, 7>}, {pipeline_mode = #tpu.pipeline_mode<synchronous>, transform_indices = @transform_1, window_bounds = array<i64: 128, 256>}, {pipeline_mode = #tpu.pipeline_mode<synchronous>, transform_indices = @transform_2, window_bounds = array<i64: 128, 128>}, {transform_indices = @transform_3, window_bounds = array<i64: 2, 1>}]} {
    %c0 = arith.constant 0 : index
    %c0_0 = arith.constant 0 : index
    %0 = vector.load %arg1[%c0, %c0_0] : memref<2x7xi32, #tpu.memory_space<vmem>>, vector<2x7xi32>
    %1 = tpu.iota {dimensions = array<i32: 1>} : vector<2x128xi32>
    %2 = tpu.iota {dimensions = array<i32: 1>} : vector<2x128xi32>
    %cst = arith.constant 0.000000e+00 : bf16
    %3 = vector.broadcast %cst : bf16 to vector<2x128xbf16>
    %4 = vector.extract_strided_slice %0 {offsets = [0, 0], sizes = [2, 1], strides = [1, 1]} : vector<2x7xi32> to vector<2x1xi32>
    %5 = vector.broadcast %4 : vector<2x1xi32> to vector<2x128xi32>
    %6 = arith.cmpi eq, %5, %1 : vector<2x128xi32>
    %7 = arith.extui %6 : vector<2x128xi1> to vector<2x128xi32>
    %8 = arith.sitofp %7 : vector<2x128xi32> to vector<2x128xf32>
    %9 = arith.truncf %8 : vector<2x128xf32> to vector<2x128xbf16>
    %10 = arith.addf %3, %9 : vector<2x128xbf16>
    %11 = vector.extract_strided_slice %0 {offsets = [0, 1], sizes = [2, 1], strides = [1, 1]} : vector<2x7xi32> to vector<2x1xi32>
    %12 = vector.broadcast %11 : vector<2x1xi32> to vector<2x128xi32>
    %13 = arith.cmpi eq, %12, %1 : vector<2x128xi32>
    %14 = arith.extui %13 : vector<2x128xi1> to vector<2x128xi32>
    %15 = arith.sitofp %14 : vector<2x128xi32> to vector<2x128xf32>
    %16 = arith.truncf %15 : vector<2x128xf32> to vector<2x128xbf16>
    %17 = arith.addf %10, %16 : vector<2x128xbf16>
    %18 = vector.extract_strided_slice %0 {offsets = [0, 2], sizes = [2, 1], strides = [1, 1]} : vector<2x7xi32> to vector<2x1xi32>
    %19 = vector.broadcast %18 : vector<2x1xi32> to vector<2x128xi32>
    %20 = arith.cmpi eq, %19, %1 : vector<2x128xi32>
    %21 = arith.extui %20 : vector<2x128xi1> to vector<2x128xi32>
    %22 = arith.sitofp %21 : vector<2x128xi32> to vector<2x128xf32>
    %23 = arith.truncf %22 : vector<2x128xf32> to vector<2x128xbf16>
    %24 = arith.addf %17, %23 : vector<2x128xbf16>
    %cst_1 = arith.constant 0.000000e+00 : bf16
    %25 = vector.broadcast %cst_1 : bf16 to vector<2x128xbf16>
    %26 = vector.extract_strided_slice %0 {offsets = [0, 3], sizes = [2, 1], strides = [1, 1]} : vector<2x7xi32> to vector<2x1xi32>
    %27 = vector.broadcast %26 : vector<2x1xi32> to vector<2x128xi32>
    %28 = arith.cmpi eq, %27, %2 : vector<2x128xi32>
    %29 = arith.extui %28 : vector<2x128xi1> to vector<2x128xi32>
    %30 = arith.sitofp %29 : vector<2x128xi32> to vector<2x128xf32>
    %31 = arith.truncf %30 : vector<2x128xf32> to vector<2x128xbf16>
    %32 = arith.addf %25, %31 : vector<2x128xbf16>
    %33 = vector.extract_strided_slice %0 {offsets = [0, 4], sizes = [2, 1], strides = [1, 1]} : vector<2x7xi32> to vector<2x1xi32>
    %34 = vector.broadcast %33 : vector<2x1xi32> to vector<2x128xi32>
    %35 = arith.cmpi eq, %34, %2 : vector<2x128xi32>
    %36 = arith.extui %35 : vector<2x128xi1> to vector<2x128xi32>
    %37 = arith.sitofp %36 : vector<2x128xi32> to vector<2x128xf32>
    %38 = arith.truncf %37 : vector<2x128xf32> to vector<2x128xbf16>
    %39 = arith.addf %32, %38 : vector<2x128xbf16>
    %40 = vector.extract_strided_slice %0 {offsets = [0, 5], sizes = [2, 1], strides = [1, 1]} : vector<2x7xi32> to vector<2x1xi32>
    %41 = vector.broadcast %40 : vector<2x1xi32> to vector<2x128xi32>
    %42 = arith.cmpi eq, %41, %2 : vector<2x128xi32>
    %43 = arith.extui %42 : vector<2x128xi1> to vector<2x128xi32>
    %44 = arith.sitofp %43 : vector<2x128xi32> to vector<2x128xf32>
    %45 = arith.truncf %44 : vector<2x128xf32> to vector<2x128xbf16>
    %46 = arith.addf %39, %45 : vector<2x128xbf16>
    %47 = vector.extract_strided_slice %0 {offsets = [0, 6], sizes = [2, 1], strides = [1, 1]} : vector<2x7xi32> to vector<2x1xi32>
    %48 = vector.broadcast %47 : vector<2x1xi32> to vector<2x128xi32>
    %49 = arith.cmpi eq, %48, %2 : vector<2x128xi32>
    %50 = arith.extui %49 : vector<2x128xi1> to vector<2x128xi32>
    %51 = arith.sitofp %50 : vector<2x128xi32> to vector<2x128xf32>
    %52 = arith.truncf %51 : vector<2x128xf32> to vector<2x128xbf16>
    %53 = arith.addf %46, %52 : vector<2x128xbf16>
    %c0_2 = arith.constant 0 : index
    %c0_3 = arith.constant 0 : index
    %54 = vector.load %arg2[%c0_2, %c0_3] : memref<128x256xbf16, #tpu.memory_space<vmem>>, vector<128x256xbf16>
    %cst_4 = arith.constant dense<0.000000e+00> : vector<2x256xf32>
    %55 = tpu.matmul %24, %54, %cst_4 {dimension_numbers = #tpu.dot_dimension_numbers<[1], [0], [0], [1], [0, 0, 1, 1], [], []>} : vector<2x128xbf16>, vector<128x256xbf16>, vector<2x256xf32> -> vector<2x256xf32>
    %c0_5 = arith.constant 0 : index
    %c0_6 = arith.constant 0 : index
    %56 = vector.load %arg3[%c0_5, %c0_6] : memref<128x128xbf16, #tpu.memory_space<vmem>>, vector<128x128xbf16>
    %cst_7 = arith.constant dense<0.000000e+00> : vector<2x128xf32>
    %57 = tpu.matmul %53, %56, %cst_7 {dimension_numbers = #tpu.dot_dimension_numbers<[1], [0], [0], [1], [0, 0, 1, 1], [], []>} : vector<2x128xbf16>, vector<128x128xbf16>, vector<2x128xf32> -> vector<2x128xf32>
    %58 = vector.extract_strided_slice %55 {offsets = [0, 0], sizes = [2, 128], strides = [1, 1]} : vector<2x256xf32> to vector<2x128xf32>
    %59 = vector.extract_strided_slice %55 {offsets = [0, 128], sizes = [2, 128], strides = [1, 1]} : vector<2x256xf32> to vector<2x128xf32>
    %60 = arith.addf %58, %57 : vector<2x128xf32>
    %61 = arith.mulf %57, %57 : vector<2x128xf32>
    %62 = arith.addf %59, %61 : vector<2x128xf32>
    %63 = arith.mulf %60, %60 : vector<2x128xf32>
    %64 = arith.subf %63, %62 : vector<2x128xf32>
    %cst_8 = arith.constant dense<0.000000e+00> : vector<2xf32>
    %65 = vector.multi_reduction <add>, %64, %cst_8 [1] : vector<2x128xf32> to vector<2xf32>
    %66 = vector.shape_cast %65 : vector<2xf32> to vector<2x1xf32>
    %cst_9 = arith.constant 5.000000e-01 : f32
    %67 = vector.broadcast %cst_9 : f32 to vector<2x1xf32>
    %68 = arith.mulf %67, %66 : vector<2x1xf32>
    %69 = arith.negf %68 : vector<2x1xf32>
    %70 = math.exp %69 : vector<2x1xf32>
    %cst_10 = arith.constant 1.000000e+00 : f32
    %71 = vector.broadcast %cst_10 : f32 to vector<2x1xf32>
    %72 = arith.addf %71, %70 : vector<2x1xf32>
    %73 = arith.divf %71, %72 : vector<2x1xf32>
    %c0_11 = arith.constant 0 : index
    %c0_12 = arith.constant 0 : index
    %74 = vector.load %arg4[%c0_11, %c0_12] : memref<2x1xf32, #tpu.memory_space<vmem>>, vector<2x1xf32>
    tpu.vector_store %arg4[%c0_11, %c0_12], %73 {strides = array<i32>} : memref<2x1xf32, #tpu.memory_space<vmem>>, vector<2x1xf32>,
    return
  }
  func.func @transform_0(%arg0: i32) -> (i32, i32) {
    %c0_i32 = arith.constant 0 : i32
    %c0_i32_0 = arith.constant 0 : i32
    return %arg0, %c0_i32 : i32, i32
  }
  func.func @transform_1(%arg0: i32) -> (i32, i32) {
    %c0_i32 = arith.constant 0 : i32
    %c0_i32_0 = arith.constant 0 : i32
    %c0_i32_1 = arith.constant 0 : i32
    return %c0_i32, %c0_i32_0 : i32, i32
  }
  func.func @transform_2(%arg0: i32) -> (i32, i32) {
    %c0_i32 = arith.constant 0 : i32
    %c0_i32_0 = arith.constant 0 : i32
    %c0_i32_1 = arith.constant 0 : i32
    return %c0_i32, %c0_i32_0 : i32, i32
  }
  func.func @transform_3(%arg0: i32) -> (i32, i32) {
    %c0_i32 = arith.constant 0 : i32
    %c0_i32_0 = arith.constant 0 : i32
    return %arg0, %c0_i32 : i32, i32
  }
}

</mosaic_0001>

<bundles_post_ra>
// kernel: tpu_custom_call.1
= control target key start
LH: loop header
LB: loop body
LE: loop exit
PB: predicated region body
PF: predicated region fallthrough
CT: control target
= control target key end

     0   :  { %8 = vsyncpa [#allocation3], 0  ;;  %s651_s0 = inlined_call_operand.hbm [shape: s32[2,7], index: 0, kind: input, shape index: {}]   ;;  %s652_s1 = inlined_call_operand.hbm [shape: bf16[128,256], index: 1, kind: input, shape index: {}]   ;;  %s653_s2 = inlined_call_operand.hbm [shape: bf16[128,128], index: 2, kind: input, shape index: {}]   ;;  %s654_s3 = inlined_call_operand.vmem [shape: f32[2,1], index: 3, kind: output, shape index: {}]  }
   0x1   :  { %9 = vsyncpa [#allocation5], 0  ;;  %s25_s14 = sshll.u32 %s652_s1, 4  ;;  %s604_s15 = smov [#allocation4]   ;;  %s26_s14 = int_to_ptr.hbm [resolvable:$true] %s25_s14 }
   0x2   :  { %s27_s16 = sshll.u32 %s604_s15, 4  ;;  %s15_s19 = sshll.u32 %s651_s0, 4  ;;  %s28_s16 = int_to_ptr.vmem [resolvable:$true] %s27_s16  ;;  %s16_s19 = int_to_ptr.hbm [resolvable:$true] %s15_s19 }
   0x3   :  { %s605_s20 = smov 128   ;;  %s606_s21 = smov 8  }
   0x4   :  { %33 = dma.hbm_to_vmem [thread:$0]  %s26_s14, 2048, %s28_s16, [#allocation5], %s605_s20, %s605_s20, %s606_s21  }
   0x5   :  { %s607_s22 = smov [#allocation2]   ;;  %s38_s26 = sshll.u32 %s653_s2, 4  ;;  %s39_s26 = int_to_ptr.hbm [resolvable:$true] %s38_s26 }
   0x6   :  { %s17_s23 = sshll.u32 %s607_s22, 4  ;;  %s608_s1 = smov [#allocation6]   ;;  %s18_s23 = int_to_ptr.vmem [resolvable:$true] %s17_s23 }
   0x7   :  { %20 = dma.hbm_to_vmem [thread:$0]  %s16_s19, 32, %s18_s23, [#allocation3]  }
   0x8   :  { %s40_s27 = sshll.u32 %s608_s1, 4  ;;  %s609_s28 = smov 64   ;;  %s41_s27 = int_to_ptr.vmem [resolvable:$true] %s40_s27 }
   0x9   :  { %s610_s29 = smov 4  }
   0xa   :  { %46 = dma.hbm_to_vmem [thread:$0]  %s39_s26, 1024, %s41_s27, [#allocation5], %s609_s28, %s609_s28, %s610_s29  }
   0xb   :  { %600 = dma.done.wait [#allocation3], 32  }
   0xc   :  { %601 = vsyncadd [#allocation3], 4294967264 }
   0xd   :  { %602 = dma.done.wait [#allocation5], 3072  }
   0xe   :  { %603 = vsyncadd [#allocation5], 4294964224  ;;  %v611_v0 = vmov 5   ;;  %v612_v1 = vmov 3   ;;  %v613_v2 = vmov 1   ;;  %v500_v9 = vld [vmem:[#allocation6 + $0x38] sm:$0xff] }
   0xf   :  { %518 = vset.pattern.permute.xlu1 %v611_v0  ;;  %516 = vset.pattern.permute.xlu0 %v612_v1  ;;  %v59_v3 = vld [vmem:[#allocation2] sm:$0x3]  ;;  %v438_v4 = vld [vmem:[#allocation4 + $0x70] sm:$0xf]  ;;  %v492_v5 = vld [vmem:[#allocation4 + $0x74] sm:$0xf0]  ;;  %v60_v0 = vlaneseq }
  0x10   :  { %520 = vset.pattern.permute.xlu2 %v613_v2  ;;  %116 = vperm.xlu1 %518, %v59_v3   ;;  %v439_v6 = vor.u32 %v492_v5, %v438_v4  ;;  %v491_v7 = vld [vmem:[#allocation4 + $0x74] sm:$0xf]  ;;  %v440_v8 = vld [vmem:[#allocation4 + $0x78] sm:$0xf0]  ;;  %v430_v11 = vld [vmem:[#allocation4 + $0x60] sm:$0xf] }
  0x11   :  { %95 = vperm.xlu0 %516, %v59_v3   ;;  %73 = vperm.xlu2 %520, %v59_v3   ;;  %v443_v10 = vor.u32 %v491_v7, %v440_v8  ;;  %v490_v12 = vld [vmem:[#allocation4 + $0x64] sm:$0xf0]  ;;  %v489_v13 = vld [vmem:[#allocation4 + $0x64] sm:$0xf]  ;;  %v432_v15 = vld [vmem:[#allocation4 + $0x68] sm:$0xf0] }
  0x12   :  { %233 = vmatpush.bf16.msra.mxu0 %v439_v6  ;;  %323 = vmatpush.bf16.msra.mxu2 %v500_v9  ;;  %v431_v14 = vor.u32 %v490_v12, %v430_v11  ;;  %v435_v16 = vor.u32 %v489_v13, %v432_v15  ;;  %v614_v17 = vmov 0   ;;  %v615_v18 = vmov 4   ;;  %v499_v21 = vld [vmem:[#allocation6 + $0x30] sm:$0xff]  ;;  %v488_v23 = vld [vmem:[#allocation4 + $0x54] sm:$0xf0]  ;;  %v498_v28 = vld [vmem:[#allocation6 + $0x28] sm:$0xff] }
  0x13   :  { %246 = vmatpush.bf16.msra.mxu1 %v443_v10  ;;  %v616_v19 = vmov 6   ;;  %v617_v20 = vmov 2   ;;  %v422_v22 = vld [vmem:[#allocation4 + $0x50] sm:$0xf]  ;;  %v487_v25 = vld [vmem:[#allocation4 + $0x54] sm:$0xf] }
  0x14   :  { %v423_v24 = vor.u32 %v488_v23, %v422_v22  ;;  %v424_v26 = vld [vmem:[#allocation4 + $0x58] sm:$0xf0]  ;;  %v414_v29 = vld [vmem:[#allocation4 + $0x40] sm:$0xf]  ;;  %v486_v30 = vld [vmem:[#allocation4 + $0x44] sm:$0xf0] }
  0x15   :  { %v427_v27 = vor.u32 %v487_v25, %v424_v26  ;;  %v415_v31 = vor.u32 %v486_v30, %v414_v29  ;;  %v485_v32 = vld [vmem:[#allocation4 + $0x44] sm:$0xf]  ;;  %v416_v33 = vld [vmem:[#allocation4 + $0x48] sm:$0xf0]  ;;  %v406_v36 = vld [vmem:[#allocation4 + $0x30] sm:$0xf] }
  0x16   :  { %234 = vmatpush.bf16.msra.mxu0 %v431_v14  ;;  %324 = vmatpush.bf16.msra.mxu2 %v499_v21  ;;  %v419_v34 = vor.u32 %v485_v32, %v416_v33  ;;  %v497_v35 = vld [vmem:[#allocation6 + $0x20] sm:$0xff]  ;;  %v484_v37 = vld [vmem:[#allocation4 + $0x34] sm:$0xf0]  ;;  %v483_v38 = vld [vmem:[#allocation4 + $0x34] sm:$0xf]  ;;  %v61_v4 = vand.u32 127, %v60_v0 }
  0x17   :  { %247 = vmatpush.bf16.msra.mxu1 %v435_v16  ;;  %v407_v39 = vor.u32 %v484_v37, %v406_v36  ;;  %v408_v40 = vld [vmem:[#allocation4 + $0x38] sm:$0xf0]  ;;  %v398_v43 = vld [vmem:[#allocation4 + $0x20] sm:$0xf]  ;;  %v482_v44 = vld [vmem:[#allocation4 + $0x24] sm:$0xf0] }
  0x18   :  { %519 = vset.pattern.permute.xlu1 %v614_v17  ;;  %v411_v41 = vor.u32 %v483_v38, %v408_v40  ;;  %v496_v42 = vld [vmem:[#allocation6 + $0x18] sm:$0xff]  ;;  %v399_v45 = vor.u32 %v482_v44, %v398_v43  ;;  %v481_v46 = vld [vmem:[#allocation4 + $0x24] sm:$0xf]  ;;  %v400_v47 = vld [vmem:[#allocation4 + $0x28] sm:$0xf0]  ;;  %v618_v7 = vmov 0.0  }
  0x19   :  { %517 = vset.pattern.permute.xlu0 %v615_v18  ;;  %63 = vperm.xlu1 %519, %v59_v3   ;;  %v403_v48 = vor.u32 %v481_v46, %v400_v47  ;;  %v495_v49 = vld [vmem:[#allocation6 + $0x10] sm:$0xff]  ;;  %v480_v51 = vld [vmem:[#allocation4 + $0x14] sm:$0xf0]  ;;  %v392_v54 = vld [vmem:[#allocation4 + $0x18] sm:$0xf0]  ;;  %vm341_vm7 = vcmask 1041408  }
  0x1a   :  { %105 = vperm.xlu0 %517, %v59_v3   ;;  %521 = vset.pattern.permute.xlu2 %v616_v19  ;;  %v390_v50 = vld [vmem:[#allocation4 + $0x10] sm:$0xf]  ;;  %v479_v53 = vld [vmem:[#allocation4 + $0x14] sm:$0xf]  ;;  %v494_v56 = vld [vmem:[#allocation6 + $0x8] sm:$0xff]  ;;  %vm365_vm10 = vcmask 1024  }
  0x1b   :  { %127 = vperm.xlu2 %521, %v59_v3   ;;  %235 = vmatpush.bf16.msra.mxu0 %v423_v24  ;;  %v391_v52 = vor.u32 %v480_v51, %v390_v50  ;;  %v395_v55 = vor.u32 %v479_v53, %v392_v54  ;;  %v382_v57 = vld [vmem:[#allocation4] sm:$0xf]  ;;  %v478_v58 = vld [vmem:[#allocation4 + $0x4] sm:$0xf0]  ;;  %v477_v60 = vld [vmem:[#allocation4 + $0x4] sm:$0xf] }
  0x1c   :  { %248 = vmatpush.bf16.msra.mxu1 %v427_v27  ;;  %325 = vmatpush.bf16.msra.mxu2 %v498_v28  ;;  %v383_v59 = vor.u32 %v478_v58, %v382_v57  ;;  %v384_v61 = vld [vmem:[#allocation4 + $0x8] sm:$0xf0]  ;;  %v493_v63 = vld [vmem:[#allocation6] sm:$0xff] }
  0x1d   :  { %v387_v62 = vor.u32 %v477_v60, %v384_v61 }
  0x1f   :  { %236 = vmatpush.bf16.msra.mxu0 %v415_v31 }
  0x20   :  { %249 = vmatpush.bf16.msra.mxu1 %v419_v34  ;;  %326 = vmatpush.bf16.msra.mxu2 %v497_v35 }
  0x21   :  { %522 = vset.pattern.permute.xlu1 %v617_v20 }
  0x22   :  { %523 = vset.pattern.permute.xlu0 %v616_v19  ;;  %84 = vperm.xlu1 %522, %v59_v3  }
  0x23   :  { %237 = vmatpush.bf16.msra.mxu0 %v407_v39 }
  0x24   :  { %250 = vmatpush.bf16.msra.mxu1 %v411_v41  ;;  %327 = vmatpush.bf16.msra.mxu2 %v496_v42 }
  0x27   :  { %238 = vmatpush.bf16.msra.mxu0 %v399_v45 }
  0x28   :  { %251 = vmatpush.bf16.msra.mxu1 %v403_v48  ;;  %328 = vmatpush.bf16.msra.mxu2 %v495_v49 }
  0x2b   :  { %239 = vmatpush.bf16.msra.mxu0 %v391_v52 }
  0x2c   :  { %252 = vmatpush.bf16.msra.mxu1 %v395_v55  ;;  %329 = vmatpush.bf16.msra.mxu2 %v494_v56 }
  0x2f   :  { %240 = vmatpush.bf16.msra.mxu0 %v383_v59 }
  0x30   :  { %253 = vmatpush.bf16.msra.mxu1 %v387_v62  ;;  %330 = vmatpush.bf16.msra.mxu2 %v493_v63 }
  0x6b   :  { %v74_v3 = vpop.permute.xlu2 %73 }
  0x6c   :  { %vm75_vm0 = vcmp.eq.s32.totalorder %v74_v3, %v61_v4 }
  0x6d   :  { %v374_v8 = vsel %vm75_vm0, 1.0, %v618_v7 }
  0x75   :  { %v128_v16 = vpop.permute.xlu2 %127 }
  0x76   :  { %vm129_vm5 = vcmp.eq.s32.totalorder %v128_v16, %v61_v4 }
  0x77   :  { %v379_v24 = vsel %vm129_vm5, 1.0, %v618_v7 }
  0x82   :  { %v117_v2 = vpop.permute.xlu1 %116 }
  0x83   :  { %v96_v1 = vpop.permute.xlu0 %95  ;;  %vm118_vm4 = vcmp.eq.s32.totalorder %v117_v2, %v61_v4 }
  0x84   :  { %vm97_vm1 = vcmp.eq.s32.totalorder %v96_v1, %v61_v4  ;;  %v378_v18 = vsel %vm118_vm4, 1.0, %v618_v7 }
  0x85   :  { %v376_v9 = vsel %vm97_vm1, 1.0, %v618_v7 }
  0x8b   :  { %v64_v6 = vpop.permute.xlu1 %63 }
  0x8c   :  { %v106_v5 = vpop.permute.xlu0 %105  ;;  %vm65_vm3 = vcmp.eq.s32.totalorder %v64_v6, %v61_v4 }
  0x8d   :  { %vm107_vm2 = vcmp.eq.s32.totalorder %v106_v5, %v61_v4  ;;  %v373_v11 = vsel %vm65_vm3, 1.0, %v618_v7 }
  0x8e   :  { %v377_v10 = vsel %vm107_vm2, 1.0, %v618_v7  ;;  %v81_v13 = vadd.f32 %v374_v8, %v373_v11 }
  0x8f   :  { %v113_v12 = vadd.f32 %v377_v10, %v376_v9 }
  0x90   :  { %v82_v15 = vpack.c.bf16 %v81_v13, %v81_v13 }
  0x91   :  { %v114_v14 = vpack.c.bf16 %v113_v12, %v113_v12 }
  0x92   :  { %v90_v19 = vunpack.c.l.bf16 %v82_v15 }
  0x93   :  { %v122_v17 = vunpack.c.l.bf16 %v114_v14 }
  0x94   :  { %v85_v20 = vpop.permute.xlu1 %84 }
  0x95   :  { %v124_v21 = vadd.f32 %v378_v18, %v122_v17  ;;  %vm86_vm6 = vcmp.eq.s32.totalorder %v85_v20, %v61_v4 }
  0x96   :  { %v375_v22 = vsel %vm86_vm6, 1.0, %v618_v7 }
  0x97   :  { %v125_v23 = vpack.c.bf16 %v124_v21, %v124_v21  ;;  %v92_v25 = vadd.f32 %v375_v22, %v90_v19 }
  0x99   :  { %v133_v26 = vunpack.c.l.bf16 %v125_v23  ;;  %v93_v27 = vpack.c.bf16 %v92_v25, %v92_v25 }
  0x9b   :  { %v135_v28 = vadd.f32 %v379_v24, %v133_v26  ;;  %241 = vmatmul.bf16.vlgmr.msra.gmra.mxu0 %v93_v27  ;;  %254 = vmatmul.bf16.vlgmr.msra.gmra.mxu1 %v93_v27 }
  0x9d   :  { %v136_v29 = vpack.c.bf16 %v135_v28, %v135_v28 }
  0x9f   :  { %331 = vmatmul.bf16.vlgmr.msra.gmra.mxu2 %v136_v29 }
 0x118   :  { %v242_v30 = vpop.f32.mrf.mxu0  ;;  %v255_v31 = vpop.f32.mrf.mxu1 }
 0x120   :  { %v244_v32 = vpop.f32.mrf.mxu0  ;;  %v257_v33 = vpop.f32.mrf.mxu1 }
 0x122   :  { %v332_v34 = vpop.f32.mrf.mxu2 }
 0x123   :  { %v336_v35 = vadd.f32 %v332_v34, %v242_v30  ;;  %v337_v36 = vmul.f32 %v332_v34, %v332_v34 }
 0x125   :  { %v338_v37 = vadd.f32 %v337_v36, %v255_v31  ;;  %v339_v38 = vmul.f32 %v336_v35, %v336_v35 }
 0x127   :  { %v340_v39 = vsub.f32 %v339_v38, %v338_v37 }
 0x129   :  { %v342_v40 = vsel %vm341_vm7, %v340_v39, 0.0 }
 0x12a   :  { %343 = vadd.xlane.f32.xlu2 %v342_v40  ;;  %v334_v41 = vpop.f32.mrf.mxu2 }
 0x19d   :  { %v344_v42 = vpop.xlane.xlu2 %343 }
 0x19e   :  { %v476_v43 = vmul.f32 -0.5, %v344_v42 }
 0x1a0   :  { %v347_v44 = vmul.f32 1.442695, %v476_v43 }
 0x1a2   :  { %524 = vpow2.f32 %v347_v44 }
 0x1a8   :  { %v525_v45 = vpop.eup %524 }
 0x1a9   :  { %v349_v46 = vadd.f32 1.0, %v525_v45 }
 0x1ab   :  { %526 = vrcp.f32 %v349_v46  ;;  %v361_v50 = vand.u32 2147483648, %v349_v46  ;;  %v359_v52 = vand.u32 2147483647, %v349_v46  ;;  %vm355_vm9 = vweird.f32 %v349_v46 }
 0x1ad   :  { %v362_v54 = vor.u32 1.1754944e-38, %v361_v50  ;;  %vm360_vm12 = vcmp.eq.f32.partialorder %v359_v52, 8.507059e+37 }
 0x1b1   :  { %v527_v47 = vpop.eup %526 }
 0x1b2   :  { %v351_v48 = vmul.f32 %v527_v47, %v349_v46  ;;  %vm356_vm8 = vweird.f32 %v527_v47 }
 0x1b3   :  { %vm357_vm11 = vmor %vm355_vm9, %vm356_vm8 }
 0x1b4   :  { %v352_v49 = vsub.f32 1.0, %v351_v48 }
 0x1b6   :  { %v353_v51 = vmul.f32 %v527_v47, %v352_v49 }
 0x1b8   :  { %v354_v53 = vadd.f32 %v527_v47, %v353_v51 }
 0x1ba   :  { %v358_v55 = vsel %vm357_vm11, %v527_v47, %v354_v53 }
 0x1bb   :  { %v363_v56 = vsel %vm360_vm12, %v362_v54, %v358_v55 }
 0x1bc   :  { %366 = vst.msk [vmem:[%s654_s3] sm:$0x3] %vm365_vm10, %v363_v56 }
 0x1bd   :  { %371 = vsyncpa [#allocation3], 1 }
 0x1be   :  { %372 = vsyncpa [#allocation5], 1 }

</bundles_post_ra>
